<compile_context>
chip_gen: v7x
topology: tpu7x:2x2x1
jax: 0.10.0
libtpu: 0.0.40
codegen_flags: <defaults>
</compile_context>

<pallas_src>
import jax
import jax.numpy as jnp
from jax.experimental import pallas as pl
from jax.experimental.pallas import tpu as pltpu

_LANE = 128        # last-dim tile width (vreg lanes)
_SUBLANE = 8       # second-to-last-dim tile width (vreg sublanes)
_MAX_ROW_TILE = 1024  # ~86% of HBM roofline at 1024-row tiles; <1 MiB each


def _round_up(x, m):
    return (x + m - 1) // m * m


def _tooth_fc_kernel(x_ref, wt_ref, b_ref, o_ref):
    # x_ref : (block_n, C)      VMEM f32 activations (partial last tile masked)
    # wt_ref: (C, T_pad)        VMEM resident pre-transposed weight (f32|bf16)
    # b_ref : (1, T_pad)        VMEM resident f32 bias
    # o_ref : (block_n, T_pad)  VMEM lane-dense logits tile (f32|bf16)
    #
    # Operand cast happens here (not in the wrapper): it lands on a VPU slot
    # that is idle under the MXU op and keeps the HBM stream of x at 4 B/elt.
    x = x_ref[...].astype(wt_ref.dtype)
    acc = jnp.dot(x, wt_ref[...], preferred_element_type=jnp.float32)
    # Bias add stays f32 (v5e VPU has no bf16 elementwise); if o_ref is bf16
    # the only narrow-precision op is a single pack on the store path.
    o_ref[...] = (acc + b_ref[...]).astype(o_ref.dtype)


def prepare_tooth_predictor_params(weight, bias, *, matmul_dtype=jnp.float32):
    """One-time parameter preparation (run at load time, NOT per forward call).

    Args:
      weight: (T, C) float32  -- nn.Linear.weight
      bias:   (T,)   float32  -- nn.Linear.bias
      matmul_dtype: dtype fed to the MXU. jnp.bfloat16 is the fast path on
        v6e/v7x (halves resident-weight DMA, matches the 256-wide bf16 MXU);
        accumulation stays f32 either way.
    Returns:
      wt_pad: (C, T_pad) weight transposed + zero-padded to a 128 multiple
      b_pad : (1, T_pad) bias zero-padded (f32)
      num_teeth: original T (for slicing the logits back)
    """
    t, c = weight.shape
    assert bias.shape == (t,)
    t_pad = _round_up(t, _LANE)
    wt_pad = jnp.zeros((c, t_pad), dtype=matmul_dtype)
    wt_pad = wt_pad.at[:, :t].set(weight.T.astype(matmul_dtype))
    b_pad = jnp.zeros((1, t_pad), dtype=jnp.float32)
    b_pad = b_pad.at[:, :t].set(bias.astype(jnp.float32))
    return wt_pad, b_pad, t


def tooth_predictor_forward(x, wt_pad, b_pad, num_teeth, *,
                            out_dtype=jnp.float32):
    """Forward pass of ToothPredictor.

    Args:
      x:        (N, C) or (N, C, 1, 1) activations
      wt_pad:   (C, T_pad) from prepare_tooth_predictor_params
      b_pad:    (1, T_pad) from prepare_tooth_predictor_params
      num_teeth: logical number of output labels T
      out_dtype: dtype of the stored logits (bf16 halves the dominant output
        HBM stream; bias add stays f32 regardless).
    Returns:
      tooth_logits: (N, T) in out_dtype
    """
    if x.ndim == 4:
        assert x.shape[2] == 1 and x.shape[3] == 1, "expected [*, *, 1, 1]"
    # flatten(start_dim=1)
    x2d = x.reshape(x.shape[0], -1)

    n, c = x2d.shape
    c_w, t_pad = wt_pad.shape
    assert c_w == c, f"in_channels mismatch: x has {c}, weight has {c_w}"
    assert t_pad % _LANE == 0
    assert b_pad.shape == (1, t_pad)
    assert 0 < num_teeth <= t_pad

    # Row tile: multiple of 8 (sublane), capped at _MAX_ROW_TILE, and sized so
    # grid_n >= 2 once N is large enough -> the "parallel" N axis shards across
    # both v7x TensorCores. No wrapper-side padding: the last grid tile may be
    # partial; Pallas masks its out-of-bounds loads/stores, and each output
    # row depends only on its own input row, so masked rows never leak.
    block_n = max(_SUBLANE,
                  min(_MAX_ROW_TILE, _round_up(pl.cdiv(n, 2), _SUBLANE)))
    grid_n = pl.cdiv(n, block_n)

    out_dtype = jnp.dtype(out_dtype)
    cost = pl.CostEstimate(
        flops=2 * n * c * t_pad,
        transcendentals=0,
        bytes_accessed=(n * c * x2d.dtype.itemsize          # activations
                        + c * t_pad * wt_pad.dtype.itemsize  # resident weight
                        + t_pad * 4                          # bias
                        + n * t_pad * out_dtype.itemsize),   # logits out
    )

    out = pl.pallas_call(
        _tooth_fc_kernel,
        out_shape=jax.ShapeDtypeStruct((n, t_pad), out_dtype),
        grid_spec=pltpu.PrefetchScalarGridSpec(
            num_scalar_prefetch=0,
            grid=(grid_n,),
            in_specs=[
                # Row tile of activations: (block_n, C). C equals the full
                # array dim, so the (8,128) constraint is satisfied.
                pl.BlockSpec((block_n, c), lambda i: (i, 0)),
                # Weight / bias: constant index_map -> resident in VMEM,
                # DMA'd once for the whole grid. (pl.Buffered(1) would trim
                # the redundant second pipeline buffer; omitted to keep
                # lowering maximally portable across jax versions.)
                pl.BlockSpec((c, t_pad), lambda i: (0, 0)),
                pl.BlockSpec((1, t_pad), lambda i: (0, 0)),
            ],
            out_specs=pl.BlockSpec((block_n, t_pad), lambda i: (i, 0)),
        ),
        compiler_params=pltpu.CompilerParams(
            dimension_semantics=("parallel",),
        ),
        cost_estimate=cost,
    )(x2d, wt_pad, b_pad)

    # Exact nn.Linear output shape (padded weight columns / bias are zero).
    # TODO(synk): fuse the downstream consumer (softmax/argmax over teeth) or
    # the sibling box-head FCs so this narrow, non-lane-aligned slice never
    # materializes as a separate XLA copy.
    return out[:, :num_teeth]


if __name__ == "__main__":
    # Small shapes consistent with the module: mask-head pooled features of
    # spatial size 1x1, in_channels=32, num_teeth = 32 FDI adult teeth + bg.
    N, C, T = 4, 32, 33

    key = jax.random.PRNGKey(0)
    kx, kw, kb, kx2 = jax.random.split(key, 4)

    x = jax.random.normal(kx, (N, C, 1, 1), dtype=jnp.float32)       # NCHW, 1x1
    weight = jax.random.normal(kw, (T, C), dtype=jnp.float32) * 0.1  # nn.Linear.weight
    bias = jax.random.normal(kb, (T,), dtype=jnp.float32) * 0.1      # nn.Linear.bias

    fwd = jax.jit(tooth_predictor_forward, static_argnums=(3,))

    # ---- f32 path: exact parity with torch nn.Linear ----
    wt_pad, b_pad, num_teeth = prepare_tooth_predictor_params(weight, bias)
    logits = jax.block_until_ready(fwd(x, wt_pad, b_pad, num_teeth))
    ref = x.reshape(N, -1) @ weight.T + bias
    assert logits.shape == (N, T)
    assert jnp.allclose(logits, ref, atol=1e-5, rtol=1e-5)

    # ---- multi-tile / partial-last-tile path (grid_n = 2, ragged N) ----
    N2 = 20
    x2 = jax.random.normal(kx2, (N2, C), dtype=jnp.float32)
    logits2 = jax.block_until_ready(fwd(x2, wt_pad, b_pad, num_teeth))
    ref2 = x2 @ weight.T + bias
    assert logits2.shape == (N2, T)
    assert jnp.allclose(logits2, ref2, atol=1e-5, rtol=1e-5)

    # ---- bf16 MXU-operand path (v6e/v7x fast path), f32 accumulation ----
    wt_bf16, b_pad_bf16, _ = prepare_tooth_predictor_params(
        weight, bias, matmul_dtype=jnp.bfloat16)
    logits_bf16 = jax.block_until_ready(fwd(x2, wt_bf16, b_pad_bf16, num_teeth))
    assert logits_bf16.shape == (N2, T)
    assert jnp.allclose(logits_bf16, ref2, atol=5e-2, rtol=5e-2)

    print("KERNEL_OK")
</pallas_src>

<mosaic_0001>
module attributes {stable_mosaic.version = 11 : i64} {
  func.func @_tooth_fc_kernel(%arg0: i32, %arg1: memref<8x32xf32, #tpu.memory_space<vmem>>, %arg2: memref<32x128xf32, #tpu.memory_space<vmem>>, %arg3: memref<1x128xf32, #tpu.memory_space<vmem>>, %arg4: memref<8x128xf32, #tpu.memory_space<vmem>>) attributes {dimension_semantics = [#tpu.dimension_semantics<parallel>], iteration_bounds = array<i64: 1>, scalar_prefetch = 0 : i64, scratch_operands = 0 : i64, tpu.core_type = #tpu.core_type<tc>, window_params = [{transform_indices = @transform_0, window_bounds = array<i64: 8, 32>}, {pipeline_mode = #tpu.pipeline_mode<synchronous>, transform_indices = @transform_1, window_bounds = array<i64: 32, 128>}, {pipeline_mode = #tpu.pipeline_mode<synchronous>, transform_indices = @transform_2, window_bounds = array<i64: 1, 128>}, {transform_indices = @transform_3, window_bounds = array<i64: 8, 128>}]} {
    %c0 = arith.constant 0 : index
    %c0_0 = arith.constant 0 : index
    %0 = vector.load %arg1[%c0, %c0_0] : memref<8x32xf32, #tpu.memory_space<vmem>>, vector<8x32xf32>
    %c0_1 = arith.constant 0 : index
    %c0_2 = arith.constant 0 : index
    %1 = vector.load %arg2[%c0_1, %c0_2] : memref<32x128xf32, #tpu.memory_space<vmem>>, vector<32x128xf32>
    %cst = arith.constant dense<0.000000e+00> : vector<8x128xf32>
    %2 = tpu.matmul %0, %1, %cst {dimension_numbers = #tpu.dot_dimension_numbers<[1], [0], [0], [1], [0, 0, 1, 1], [], []>} : vector<8x32xf32>, vector<32x128xf32>, vector<8x128xf32> -> vector<8x128xf32>
    %c0_3 = arith.constant 0 : index
    %c0_4 = arith.constant 0 : index
    %3 = vector.load %arg3[%c0_3, %c0_4] : memref<1x128xf32, #tpu.memory_space<vmem>>, vector<1x128xf32>
    %4 = vector.broadcast %3 : vector<1x128xf32> to vector<8x128xf32>
    %5 = arith.addf %2, %4 : vector<8x128xf32>
    %c0_5 = arith.constant 0 : index
    %c0_6 = arith.constant 0 : index
    %6 = vector.load %arg4[%c0_5, %c0_6] : memref<8x128xf32, #tpu.memory_space<vmem>>, vector<8x128xf32>
    tpu.vector_store %arg4[%c0_5, %c0_6], %5 {strides = array<i32>} : memref<8x128xf32, #tpu.memory_space<vmem>>, vector<8x128xf32>,
    return
  }
  func.func @transform_0(%arg0: i32) -> (i32, i32) {
    %c0_i32 = arith.constant 0 : i32
    %c0_i32_0 = arith.constant 0 : i32
    return %arg0, %c0_i32 : i32, i32
  }
  func.func @transform_1(%arg0: i32) -> (i32, i32) {
    %c0_i32 = arith.constant 0 : i32
    %c0_i32_0 = arith.constant 0 : i32
    %c0_i32_1 = arith.constant 0 : i32
    return %c0_i32, %c0_i32_0 : i32, i32
  }
  func.func @transform_2(%arg0: i32) -> (i32, i32) {
    %c0_i32 = arith.constant 0 : i32
    %c0_i32_0 = arith.constant 0 : i32
    %c0_i32_1 = arith.constant 0 : i32
    return %c0_i32, %c0_i32_0 : i32, i32
  }
  func.func @transform_3(%arg0: i32) -> (i32, i32) {
    %c0_i32 = arith.constant 0 : i32
    %c0_i32_0 = arith.constant 0 : i32
    return %arg0, %c0_i32 : i32, i32
  }
}

</mosaic_0001>

<bundles_post_ra>
// kernel: tooth_predictor_forward.1
= control target key start
LH: loop header
LB: loop body
LE: loop exit
PB: predicated region body
PF: predicated region fallthrough
CT: control target
= control target key end

     0   :  { %8 = vsyncpa [#allocation3], 0  ;;  %s329_s0 = inlined_call_operand.hbm [shape: f32[4,32], index: 0, kind: input, shape index: {}]   ;;  %s330_s1 = inlined_call_operand.hbm [shape: f32[32,128], index: 1, kind: input, shape index: {}]   ;;  %s331_s2 = inlined_call_operand.vmem [shape: f32[1,128], index: 2, kind: input, shape index: {}]   ;;  %s332_s3 = inlined_call_operand.hbm [shape: f32[4,128], index: 3, kind: output, shape index: {}]  }
   0x1   :  { %9 = vsyncpa [#allocation6], 0 }
   0x2   :  { %10 = vsyncpa [#allocation4], 0 }
   0x3   :  { %15 = vsyncadd [#allocation3], 64  ;;  %s254_s12 = smov [#allocation2]   ;;  %s182_s16 = scalar_lea.hbm %s329_s0, 64 }
   0x4   :  { %s16_s13 = sshll.u32 %s254_s12, 4  ;;  %p183_p0 = scmp.ne.s32.totalorder %s329_s0, %s182_s16  ;;  %s17_s13 = int_to_ptr.vmem [resolvable:$true] %s16_s13 }
   0x5   :  { %p186_p1 = scmp.lt.u32.totalorder %s182_s16, %s329_s0 }
   0x7   :  { %p188_p2 = pnand %p186_p1, %p183_p0 }
   0x9   :  { %191 = shalt.err (!%p188_p2)
}
   0xa   :  { %s192_s21 = scalar_lea.vmem %s17_s13, 64  ;;  %s196_s22 = scalar_lea.vmem %s17_s13, 128 }
   0xb   :  { %p193_p3 = scmp.ne.s32.totalorder %s17_s13, %s192_s21  ;;  %p197_p4 = scmp.lt.s32.totalorder %s17_s13, %s17_s13 }
   0xc   :  { %p198_p5 = scmp.lt.s32.totalorder %s196_s22, %s192_s21 }
   0xe   :  { %p199_p6 = por %p198_p5, %p197_p4 }
  0x10   :  { %p200_p7 = pnand %p199_p6, %p193_p3 }
  0x12   :  { %203 = shalt.err (!%p200_p7)
}
  0x13   :  { %s255_s23 = smov 64   ;;  %s256_s24 = smov 4  }
  0x14   :  { %22 = dma.hbm_to_vmem [thread:$0]  %s329_s0, 64, %s17_s13, [#allocation3], %s255_s23, %s255_s23, %s256_s24  }
  0x15   :  { %s257_s27 = smov [#allocation5]   ;;  %s204_s4 = scalar_lea.hbm %s330_s1, 512 }
  0x16   :  { %s28_s28 = sshll.u32 %s257_s27, 4  ;;  %p205_p8 = scmp.ne.s32.totalorder %s330_s1, %s204_s4  ;;  %s29_s28 = int_to_ptr.vmem [resolvable:$true] %s28_s28 }
  0x17   :  { %p208_p9 = scmp.lt.u32.totalorder %s204_s4, %s330_s1 }
  0x19   :  { %p210_p10 = pnand %p208_p9, %p205_p8 }
  0x1b   :  { %213 = shalt.err (!%p210_p10)
}
  0x1c   :  { %s214_s9 = scalar_lea.vmem %s29_s28, 512  ;;  %p219_p12 = scmp.lt.s32.totalorder %s29_s28, %s29_s28 }
  0x1d   :  { %p215_p11 = scmp.ne.s32.totalorder %s29_s28, %s214_s9  ;;  %p220_p13 = scmp.lt.s32.totalorder %s214_s9, %s214_s9 }
  0x1f   :  { %p221_p0 = por %p220_p13, %p219_p12 }
  0x21   :  { %p222_p1 = pnand %p221_p0, %p215_p11 }
  0x23   :  { %225 = shalt.err (!%p222_p1)
}
  0x24   :  { %s258_s0 = smov 128   ;;  %s259_s10 = smov 8  }
  0x25   :  { %34 = dma.hbm_to_vmem [thread:$0]  %s330_s1, 512, %s29_s28, [#allocation6], %s258_s0, %s258_s0, %s259_s10  }
  0x26   :  { %248 = dma.done.wait [#allocation3], 128  }
  0x27   :  { %249 = vsyncadd [#allocation3], 4294967168 }
  0x28   :  { %250 = dma.done.wait [#allocation6], 512  }
  0x29   :  { %251 = vsyncadd [#allocation6], 4294966784  ;;  %v260_v0 = vmov 0.0|0.0   ;;  %vm261_vm0 = vmmov 0   ;;  %v262_v1 = vmov 0.0   ;;  %v44_v2 = vld [vmem:[#allocation5] sm:$0xff] }
  0x2a   :  { %166 = vmatprep.subr.bf16.mxu0 %v260_v0  ;;  %163 = vmatprep.mubr.msk.f32.mxu0 %vm261_vm0, %v262_v1  ;;  %v45_v3 = vld [vmem:[#allocation5 + $0x8] sm:$0xff]  ;;  %v46_v4 = vld [vmem:[#allocation5 + $0x10] sm:$0xff]  ;;  %v47_v6 = vld [vmem:[#allocation5 + $0x18] sm:$0xff]  ;;  %vm55_vm1 = vcmask 261120  }
  0x2b   :  { %v167_v5 = vpack.c.bf16 %v45_v3, %v44_v2  ;;  %v170_v7 = vpack.c.bf16 %v47_v6, %v46_v4  ;;  %v43_v8 = vld [vmem:[#allocation2] sm:$0xff] }
  0x2c   :  { %v148_v9 = vld [vmem:[%s331_s2] ss:$0 sm:$0xff] }
  0x2d   :  { %168 = vmatpush3.bf16.msra.mxu0 %v167_v5 }
  0x2e   :  { %169 = vmatprep.subr.bf16.mxu0 %v260_v0 }
  0x31   :  { %171 = vmatpush3.bf16.msra.mxu0 %v170_v7 }
  0x34   :  { %164 = vmatmul.mubr.msk.f32.vlgmr.msra.gmra.mrb[0].mxu0 %vm55_vm1, %v43_v8 }
 0x107   :  { %v125_v10 = vpop.f32.mrb[0].mxu0 }
 0x108   :  { %v126_v11 = vadd.f32 %v148_v9, %v125_v10  ;;  %v165_v12 = vpop.f32.mrb[1].mxu0 }
 0x10a   :  { %129 = vst [vmem:[#allocation7] sm:$0xff] %v126_v11 }
 0x10b   :  { %134 = vsyncadd [#allocation4], 64  ;;  %s263_s14 = smov [#allocation7]  }
 0x10c   :  { %s135_s15 = sshll.u32 %s263_s14, 4  ;;  %s136_s15 = int_to_ptr.vmem [resolvable:$true] %s135_s15 }
 0x10d   :  { %s226_s16 = scalar_lea.vmem %s136_s15, 64  ;;  %s230_s17 = scalar_lea.vmem %s136_s15, 128 }
 0x10e   :  { %p227_p2 = scmp.ne.s32.totalorder %s136_s15, %s226_s16  ;;  %p231_p3 = scmp.lt.s32.totalorder %s136_s15, %s136_s15 }
 0x10f   :  { %p232_p4 = scmp.lt.s32.totalorder %s230_s17, %s226_s16 }
 0x111   :  { %p233_p5 = por %p232_p4, %p231_p3 }
 0x113   :  { %p234_p6 = pnand %p233_p5, %p227_p2 }
 0x115   :  { %237 = shalt.err (!%p234_p6)
}
 0x116   :  { %s238_s2 = scalar_lea.hbm %s332_s3, 64 }
 0x117   :  { %p239_p7 = scmp.ne.s32.totalorder %s332_s3, %s238_s2  ;;  %p242_p8 = scmp.lt.u32.totalorder %s238_s2, %s332_s3 }
 0x119   :  { %p244_p9 = pnand %p242_p8, %p239_p7 }
 0x11b   :  { %247 = shalt.err (!%p244_p9)
}
 0x11c   :  { %141 = dma.vmem_to_hbm [thread:$0]  %s136_s15, 64, %s332_s3, [#allocation4], %s255_s23, %s255_s23, %s256_s24  }
 0x11d   :  { %252 = dma.done.wait [#allocation4], 128  }
 0x11e   :  { %253 = vsyncadd [#allocation4], 4294967168 }
 0x11f   :  { %145 = vsyncpa [#allocation3], 1 }
 0x120   :  { %146 = vsyncpa [#allocation6], 1 }
 0x121   :  { %147 = vsyncpa [#allocation4], 1 }

</bundles_post_ra>
